<compile_context>
chip_gen: v6e
topology: v6e:2x2x1
jax: 0.10.0
libtpu: 0.0.40
codegen_flags: <defaults>
</compile_context>

<pallas_src>
import functools

import jax
import jax.numpy as jnp
from jax.experimental import pallas as pl
from jax.experimental.pallas import tpu as pltpu

BN_EPS = 1e-5
NEG_SLOPE = 0.2


def _pick_tile_n(n):
    """Largest lane-dense tile (multiple of 128) that divides N; fall back to full N."""
    for t in (2048, 1024, 512, 256, 128):
        if n % t == 0:
            return t
    # TODO(synk): for very large N not divisible by 128, pad N instead of a whole-N block.
    return n


# --------------------------------------------------------------------------------------
# Kernels
# --------------------------------------------------------------------------------------
def _fused_layer_kernel(x_ref, w_ref, scale_ref, shift_ref,
                        y_ref, psum_ref, psq_ref, *, apply_prev_act):
    """[prev-layer folded-BN affine + LeakyReLU] -> 1x1-conv matmul -> BN partial stats.

    x_ref:     (1, Cin,  TILE_N)  raw pre-activation of previous layer (or the module input)
    w_ref:     (Cout, Cin)        conv weight (resident in VMEM across the grid)
    scale_ref: (Cin, 1)           prev-layer folded BN scale = gamma * rsqrt(var + eps)
    shift_ref: (Cin, 1)           prev-layer folded BN shift = beta - mean * scale
    y_ref:     (1, Cout, TILE_N)  raw pre-activation of this layer (lane-dense store)
    psum_ref:  (1, 1, Cout, 1)    per-tile sum over lanes
    psq_ref:   (1, 1, Cout, 1)    per-tile sum of squares over lanes
    """
    x = x_ref[0].astype(jnp.float32)                       # (Cin, TILE_N)
    if apply_prev_act:
        z = x * scale_ref[...] + shift_ref[...]            # folded BN affine (per-channel FMA)
        x = jnp.where(z >= 0, z, NEG_SLOPE * z)            # LeakyReLU(0.2)

    # 1x1 Conv1d == per-position linear on the MXU, f32 accumulation.
    # Conv bias intentionally omitted: BN (training-mode) centering cancels it exactly.
    y = jnp.dot(w_ref[...].astype(jnp.float32), x,
                preferred_element_type=jnp.float32)        # (Cout, TILE_N)
    y_ref[0] = y.astype(y_ref.dtype)

    psum_ref[...] = jnp.sum(y, axis=1, keepdims=True)[None, None]       # (1,1,Cout,1)
    psq_ref[...] = jnp.sum(y * y, axis=1, keepdims=True)[None, None]    # (1,1,Cout,1)


def _bn_act_kernel(y_ref, scale_ref, shift_ref, o_ref):
    """Final layer: folded-BN affine + LeakyReLU on a lane-dense tile."""
    y = y_ref[0].astype(jnp.float32)                       # (C, TILE_N)
    z = y * scale_ref[...] + shift_ref[...]
    o_ref[0] = jnp.where(z >= 0, z, NEG_SLOPE * z).astype(o_ref.dtype)


# --------------------------------------------------------------------------------------
# pallas_call wrappers
# --------------------------------------------------------------------------------------
def _fused_layer(x, w, scale_prev, shift_prev, *, apply_prev_act, tile_n, act_dtype):
    B, cin, N = x.shape
    cout = w.shape[0]
    nt = N // tile_n
    kernel = functools.partial(_fused_layer_kernel, apply_prev_act=apply_prev_act)
    return pl.pallas_call(
        kernel,
        out_shape=(
            jax.ShapeDtypeStruct((B, cout, N), act_dtype),       # raw pre-activation y
            jax.ShapeDtypeStruct((B, nt, cout, 1), jnp.float32),  # per-tile sum
            jax.ShapeDtypeStruct((B, nt, cout, 1), jnp.float32),  # per-tile sum of squares
        ),
        grid=(B, nt),
        in_specs=[
            pl.BlockSpec((1, cin, tile_n), lambda b, t: (b, 0, t)),   # streamed input tile
            pl.BlockSpec((cout, cin), lambda b, t: (0, 0)),           # resident weight
            pl.BlockSpec((cin, 1), lambda b, t: (0, 0)),              # resident prev scale
            pl.BlockSpec((cin, 1), lambda b, t: (0, 0)),              # resident prev shift
        ],
        out_specs=(
            pl.BlockSpec((1, cout, tile_n), lambda b, t: (b, 0, t)),
            pl.BlockSpec((1, 1, cout, 1), lambda b, t: (b, t, 0, 0)),
            pl.BlockSpec((1, 1, cout, 1), lambda b, t: (b, t, 0, 0)),
        ),
        compiler_params=pltpu.CompilerParams(
            dimension_semantics=("parallel", "parallel")),
    )(x, w, scale_prev, shift_prev)


def _bn_act(y, scale, shift, *, tile_n):
    B, c, N = y.shape
    nt = N // tile_n
    return pl.pallas_call(
        _bn_act_kernel,
        out_shape=jax.ShapeDtypeStruct((B, c, N), jnp.float32),
        grid=(B, nt),
        in_specs=[
            pl.BlockSpec((1, c, tile_n), lambda b, t: (b, 0, t)),
            pl.BlockSpec((c, 1), lambda b, t: (0, 0)),
            pl.BlockSpec((c, 1), lambda b, t: (0, 0)),
        ],
        out_specs=pl.BlockSpec((1, c, tile_n), lambda b, t: (b, 0, t)),
        compiler_params=pltpu.CompilerParams(
            dimension_semantics=("parallel", "parallel")),
    )(y, scale, shift)


# --------------------------------------------------------------------------------------
# Module: params + forward
# --------------------------------------------------------------------------------------
def init_atom_linear_params(channels, key):
    """Conv1d(Ci, Co, 1): weight (Co, Ci) (PyTorch (Co,Ci,1) squeezed), bias (Co,).
    BatchNorm1d(Co): gamma = ones, beta = zeros (PyTorch defaults)."""
    params = []
    for i in range(len(channels) - 1):
        cin, cout = channels[i], channels[i + 1]
        key, kw, kb = jax.random.split(key, 3)
        bound = 1.0 / jnp.sqrt(cin)
        w = jax.random.uniform(kw, (cout, cin), jnp.float32, -bound, bound)
        b = jax.random.uniform(kb, (cout,), jnp.float32, -bound, bound)
        gamma = jnp.ones((cout,), jnp.float32)
        beta = jnp.zeros((cout,), jnp.float32)
        params.append((w, b, gamma, beta))
    return params


def atom_linear_forward(atom_feats, params, *, act_dtype=jnp.float32):
    """atom_feats: (B, C0, N) -> (B, Clast, N).  Matches Atom_Linear.forward (train-mode BN)."""
    B, c0, N = atom_feats.shape
    tile_n = _pick_tile_n(N)
    count = jnp.float32(B * N)

    y = atom_feats
    scale = jnp.ones((c0, 1), jnp.float32)   # identity affine for the very first layer
    shift = jnp.zeros((c0, 1), jnp.float32)

    for li, (w, _bias_unused, gamma, beta) in enumerate(params):
        # (conv bias cancels exactly in training-mode BN -> not used in the kernel)
        y, psum, psq = _fused_layer(
            y, w, scale, shift,
            apply_prev_act=(li > 0), tile_n=tile_n, act_dtype=act_dtype)

        # Fold BN into a single per-channel FMA (tiny per-channel vectors; plain JAX).
        mean = jnp.sum(psum, axis=(0, 1))[:, 0] / count            # (Cout,)
        ex2 = jnp.sum(psq, axis=(0, 1))[:, 0] / count              # (Cout,)
        var = jnp.maximum(ex2 - mean * mean, 0.0)
        s = gamma * jax.lax.rsqrt(var + BN_EPS)                    # (Cout,)
        scale = s[:, None]                                         # (Cout, 1)
        shift = (beta - mean * s)[:, None]                         # (Cout, 1)

    # Only the final layer needs a standalone normalize + LeakyReLU pass.
    return _bn_act(y, scale, shift, tile_n=tile_n)


# --------------------------------------------------------------------------------------
# Pure-jnp reference (keeps the conv bias, exactly as the PyTorch module computes it)
# --------------------------------------------------------------------------------------
def _reference_forward(atom_feats, params):
    x = atom_feats                                                 # (B, C, N)
    for (w, b, gamma, beta) in params:
        y = jnp.einsum("oc,bcn->bon", w, x) + b[None, :, None]
        mean = jnp.mean(y, axis=(0, 2), keepdims=True)
        var = jnp.mean((y - mean) ** 2, axis=(0, 2), keepdims=True)
        y = (y - mean) * jax.lax.rsqrt(var + BN_EPS) * gamma[None, :, None] + beta[None, :, None]
        x = jnp.where(y >= 0, y, NEG_SLOPE * y)
    return x


if __name__ == "__main__":
    key = jax.random.PRNGKey(0)
    channels = [4, 32, 64]          # Atom_Linear(channels=[4, 32, 64])
    B, N = 2, 384                   # N = 3 * 128 -> exercises the (B, N-tile) grid = (2, 3)

    k_x, k_p = jax.random.split(key)
    atom_feats = jax.random.normal(k_x, (B, channels[0], N), jnp.float32)
    params = init_atom_linear_params(channels, k_p)

    out = jax.block_until_ready(atom_linear_forward(atom_feats, params))
    ref = jax.block_until_ready(_reference_forward(atom_feats, params))

    assert out.shape == (B, channels[-1], N)
    assert jnp.allclose(out, ref, atol=2e-4, rtol=2e-4), float(jnp.max(jnp.abs(out - ref)))

    print("KERNEL_OK")
</pallas_src>

<mosaic_0001>
module attributes {stable_mosaic.version = 11 : i64} {
  func.func @_fused_layer_kernel(%arg0: i32, %arg1: i32, %arg2: memref<1x4x128xf32, #tpu.memory_space<vmem>>, %arg3: memref<32x4xf32, #tpu.memory_space<vmem>>, %arg4: memref<4x1xf32, #tpu.memory_space<vmem>>, %arg5: memref<4x1xf32, #tpu.memory_space<vmem>>, %arg6: memref<1x32x128xf32, #tpu.memory_space<vmem>>, %arg7: memref<1x1x32x1xf32, #tpu.memory_space<vmem>>, %arg8: memref<1x1x32x1xf32, #tpu.memory_space<vmem>>) attributes {dimension_semantics = [#tpu.dimension_semantics<parallel>, #tpu.dimension_semantics<parallel>], iteration_bounds = array<i64: 2, 3>, scalar_prefetch = 0 : i64, scratch_operands = 0 : i64, tpu.core_type = #tpu.core_type<tc>, window_params = [{transform_indices = @transform_0, window_bounds = array<i64: 1, 4, 128>}, {pipeline_mode = #tpu.pipeline_mode<synchronous>, transform_indices = @transform_1, window_bounds = array<i64: 32, 4>}, {pipeline_mode = #tpu.pipeline_mode<synchronous>, transform_indices = @transform_2, window_bounds = array<i64: 4, 1>}, {pipeline_mode = #tpu.pipeline_mode<synchronous>, transform_indices = @transform_3, window_bounds = array<i64: 4, 1>}, {transform_indices = @transform_4, window_bounds = array<i64: 1, 32, 128>}, {transform_indices = @transform_5, window_bounds = array<i64: 1, 1, 32, 1>}, {transform_indices = @transform_6, window_bounds = array<i64: 1, 1, 32, 1>}]} {
    %c0 = arith.constant 0 : index
    %c0_0 = arith.constant 0 : index
    %c0_1 = arith.constant 0 : index
    %0 = vector.load %arg2[%c0, %c0_0, %c0_1] : memref<1x4x128xf32, #tpu.memory_space<vmem>>, vector<1x4x128xf32>
    %1 = vector.shape_cast %0 : vector<1x4x128xf32> to vector<4x128xf32>
    %c0_2 = arith.constant 0 : index
    %c0_3 = arith.constant 0 : index
    %2 = vector.load %arg3[%c0_2, %c0_3] : memref<32x4xf32, #tpu.memory_space<vmem>>, vector<32x4xf32>
    %cst = arith.constant dense<0.000000e+00> : vector<32x128xf32>
    %3 = tpu.matmul %2, %1, %cst {dimension_numbers = #tpu.dot_dimension_numbers<[1], [0], [0], [1], [0, 0, 1, 1], [], []>} : vector<32x4xf32>, vector<4x128xf32>, vector<32x128xf32> -> vector<32x128xf32>
    %c0_4 = arith.constant 0 : index
    %c0_5 = arith.constant 0 : index
    %c0_6 = arith.constant 0 : index
    %4 = vector.load %arg6[%c0_4, %c0_5, %c0_6] : memref<1x32x128xf32, #tpu.memory_space<vmem>>, vector<1x32x128xf32>
    %5 = vector.shape_cast %4 : vector<1x32x128xf32> to vector<32x128xf32>
    %6 = vector.shape_cast %3 : vector<32x128xf32> to vector<1x32x128xf32>
    tpu.vector_store %arg6[%c0_4, %c0_5, %c0_6], %6 {strides = array<i32>} : memref<1x32x128xf32, #tpu.memory_space<vmem>>, vector<1x32x128xf32>,
    %cst_7 = arith.constant dense<0.000000e+00> : vector<32xf32>
    %7 = vector.multi_reduction <add>, %3, %cst_7 [1] : vector<32x128xf32> to vector<32xf32>
    %8 = vector.shape_cast %7 : vector<32xf32> to vector<32x1xf32>
    %9 = vector.shape_cast %8 : vector<32x1xf32> to vector<1x1x32x1xf32>
    %c0_8 = arith.constant 0 : index
    %c0_9 = arith.constant 0 : index
    %c0_10 = arith.constant 0 : index
    %c0_11 = arith.constant 0 : index
    %10 = vector.load %arg7[%c0_8, %c0_9, %c0_10, %c0_11] : memref<1x1x32x1xf32, #tpu.memory_space<vmem>>, vector<1x1x32x1xf32>
    tpu.vector_store %arg7[%c0_8, %c0_9, %c0_10, %c0_11], %9 {strides = array<i32>} : memref<1x1x32x1xf32, #tpu.memory_space<vmem>>, vector<1x1x32x1xf32>,
    %11 = arith.mulf %3, %3 : vector<32x128xf32>
    %cst_12 = arith.constant dense<0.000000e+00> : vector<32xf32>
    %12 = vector.multi_reduction <add>, %11, %cst_12 [1] : vector<32x128xf32> to vector<32xf32>
    %13 = vector.shape_cast %12 : vector<32xf32> to vector<32x1xf32>
    %14 = vector.shape_cast %13 : vector<32x1xf32> to vector<1x1x32x1xf32>
    %c0_13 = arith.constant 0 : index
    %c0_14 = arith.constant 0 : index
    %c0_15 = arith.constant 0 : index
    %c0_16 = arith.constant 0 : index
    %15 = vector.load %arg8[%c0_13, %c0_14, %c0_15, %c0_16] : memref<1x1x32x1xf32, #tpu.memory_space<vmem>>, vector<1x1x32x1xf32>
    tpu.vector_store %arg8[%c0_13, %c0_14, %c0_15, %c0_16], %14 {strides = array<i32>} : memref<1x1x32x1xf32, #tpu.memory_space<vmem>>, vector<1x1x32x1xf32>,
    return
  }
  func.func @transform_0(%arg0: i32, %arg1: i32) -> (i32, i32, i32) {
    %c0_i32 = arith.constant 0 : i32
    %c0_i32_0 = arith.constant 0 : i32
    return %arg0, %c0_i32, %arg1 : i32, i32, i32
  }
  func.func @transform_1(%arg0: i32, %arg1: i32) -> (i32, i32) {
    %c0_i32 = arith.constant 0 : i32
    %c0_i32_0 = arith.constant 0 : i32
    %c0_i32_1 = arith.constant 0 : i32
    return %c0_i32, %c0_i32_0 : i32, i32
  }
  func.func @transform_2(%arg0: i32, %arg1: i32) -> (i32, i32) {
    %c0_i32 = arith.constant 0 : i32
    %c0_i32_0 = arith.constant 0 : i32
    %c0_i32_1 = arith.constant 0 : i32
    return %c0_i32, %c0_i32_0 : i32, i32
  }
  func.func @transform_3(%arg0: i32, %arg1: i32) -> (i32, i32) {
    %c0_i32 = arith.constant 0 : i32
    %c0_i32_0 = arith.constant 0 : i32
    %c0_i32_1 = arith.constant 0 : i32
    return %c0_i32, %c0_i32_0 : i32, i32
  }
  func.func @transform_4(%arg0: i32, %arg1: i32) -> (i32, i32, i32) {
    %c0_i32 = arith.constant 0 : i32
    %c0_i32_0 = arith.constant 0 : i32
    return %arg0, %c0_i32, %arg1 : i32, i32, i32
  }
  func.func @transform_5(%arg0: i32, %arg1: i32) -> (i32, i32, i32, i32) {
    %c0_i32 = arith.constant 0 : i32
    %c0_i32_0 = arith.constant 0 : i32
    %c0_i32_1 = arith.constant 0 : i32
    return %arg0, %arg1, %c0_i32, %c0_i32_0 : i32, i32, i32, i32
  }
  func.func @transform_6(%arg0: i32, %arg1: i32) -> (i32, i32, i32, i32) {
    %c0_i32 = arith.constant 0 : i32
    %c0_i32_0 = arith.constant 0 : i32
    %c0_i32_1 = arith.constant 0 : i32
    return %arg0, %arg1, %c0_i32, %c0_i32_0 : i32, i32, i32, i32
  }
}

</mosaic_0001>

<bundles_post_ra>
// kernel: tpu_custom_call.1
= control target key start
LH: loop header
LB: loop body
LE: loop exit
PB: predicated region body
PF: predicated region fallthrough
CT: control target
= control target key end

     0   :  { %12 = vsyncpa [#allocation3], 0  ;;  %s1088_s0 = inlined_call_operand.vmem [shape: f32[2,4,384], index: 0, kind: input, shape index: {}]   ;;  %s1089_s1 = inlined_call_operand.vmem [shape: f32[32,4], index: 1, kind: input, shape index: {}]   ;;  %s1090_s2 = inlined_call_operand.vmem [shape: f32[4,1], index: 2, kind: input, shape index: {}]   ;;  %s1091_s3 = inlined_call_operand.vmem [shape: f32[4,1], index: 3, kind: input, shape index: {}]   ;;  %s1092_s4 = inlined_call_operand.hbm [shape: f32[2,32,384], index: 4, kind: output, shape index: {0}]   ;;  %s1093_s5 = inlined_call_operand.vmem [shape: f32[2,3,32,1], index: 5, kind: output, shape index: {1}]   ;;  %s1094_s6 = inlined_call_operand.vmem [shape: f32[2,3,32,1], index: 6, kind: output, shape index: {2}]  }
   0x1   :  { %14 = vsyncpa [#allocation3 + $0x1], 0  ;;  %s907_s21 = smov 0   ;;  %s909_s22 = smov 0  }
   0x2   :  { %s911_s23 = smov 0   ;;  %s913_s2 = smov 0  }
   0x3   :  { %s915_s3 = smov 0   ;;  %s917_s24 = smov 0  }
   0x4   :  { %s919_s25 = smov 0   ;;  %s921_s26 = smov 0  }
   0x5 LB: > { %s662_s27 = sadd.s32 4294967295, %s866_s26   ;;  %s663_s28 = sadd.s32 4294967294, %s866_s26   ;;  %s866_s26 = sphi %s921_s26, %s20_s26   ;;  %s862_s25 = sphi %s919_s25, %s1103_s25   ;;  %s858_s24 = sphi %s917_s24, %s1102_s24   ;;  %s854_s3 = sphi %s915_s3, %s1101_s3   ;;  %s850_s2 = sphi %s913_s2, %s1100_s2   ;;  %s846_s23 = sphi %s911_s23, %s1099_s23   ;;  %s842_s22 = sphi %s909_s22, %s1098_s22   ;;  %s838_s21 = sphi %s907_s21, %s1097_s21  }
   0x6   : > { %s29_s29 = sadd.s32 1, %s858_s24  ;;  %s32_s30 = sadd.s32 1, %s862_s25 }
   0x7   : > { %p30_p0 = scmp.ge.s32.totalorder %s29_s29, 3  ;;  %p142_p1 = scmp.ne.s32.totalorder %s846_s23, %s842_s22 }
   0x8   : > { %p143_p2 = scmp.eq.s32.totalorder %s662_s27, 5  ;;  %p148_p5 = scmp.ne.s32.totalorder %s842_s22, %s838_s21 }
   0x9   : > { %s1105_s29 = smov (%p30_p0, %s29_s29), 0  ;;  %s1107_s30 = smov (!%p30_p0, %s32_s30), %s862_s25 }
   0xa   : > { %s128_s7 = ssub.s32 %s858_s24, %s1105_s29  ;;  %p958_p3 = por %p143_p2, %p142_p1 }
   0xb   : > { %p34_p4 = scmp.ge.s32.totalorder %s1107_s30, 2  ;;  %p149_p6 = scmp.eq.s32.totalorder %s663_s28, 5 }
   0xc   : > { %p666_p7 = scmp.ge.s32.totalorder %s866_s26, 1  ;;  %p243_p9 = scmp.lt.s32.totalorder %s866_s26, 7 }
   0xd   : > { %s1109_s30 = smov (%p34_p4, %s1107_s30), 0  ;;  %p967_p8 = por %p149_p6, %p148_p5 }
   0xe   : > { %s127_s10 = ssub.s32 %s862_s25, %s1109_s30  ;;  %s132_s11 = sadd.s32 1, %s846_s23 }
   0xf   : > { %s129_s12 = sor.u32 %s128_s7, %s127_s10  ;;  %p244_p10 = pnand %p666_p7, %p243_p9 }
  0x10   : > { %p130_p11 = scmp.eq.s32.totalorder %s129_s12, 0  ;;  %p294_p12 = scmp.lt.s32.totalorder (!%p244_p10), %s854_s3, 1 }
  0x11   : > { %247 = sbr.rel (%p244_p10) target bundleno = 376 (0x178), region = 36  ;;  %p296_p13 = scmp.lt.s32.totalorder (!%p244_p10), %s850_s2, 2 }
  0x12   : > { %s976_s13 = scalar_select %p130_p11, %s846_s23, %s132_s11  }
  0x13   : > { %s269_s17 = sand.u32 (!%p244_p10), 1, %s842_s22   ;;  %s699_s7 = smul.u32 (!%p244_p10), 12, %s854_s3 }
  0x14   : > { %s1021_s16 = scalar_lea.sflag (!%p244_p10), [#allocation3], %s269_s17 }
  0x15   : > { %s490_s10 = sadd.s32 (!%p244_p10), %s850_s2, %s699_s7 }
  0x16   : > { %v321_v0 = vld [vmem:[%s1089_s1] sm:$0xff]  ;;  %vm325_vm0 = vcmask 31744   ;;  %v323_v1 = vld [vmem:[%s1089_s1 + $0x10] sm:$0xff]  ;;  %s989_s18 = scalar_select %p294_p12, %s854_s3, 1  ;;  %vm338_vm1 = vcmask 1043456   ;;  %v322_v3 = vld [vmem:[%s1089_s1 + $0x8] sm:$0xff] }
  0x17   : > { %689 = vmatprep.mubr.msk.f32.mxu0 %vm325_vm0, %v321_v0  ;;  %692 = vmatprep.mubr.msk.f32.mxu1 %vm325_vm0, %v323_v1  ;;  %s992_s19 = scalar_select %p296_p13, %s850_s2, 2  ;;  %v324_v4 = vld [vmem:[%s1089_s1 + $0x18] sm:$0xff] }
  0x18   : > { %s697_s20 = smul.u32 3, %s989_s18  ;;  %s868_s2 = smov [#allocation2]  }
  0x19   : > { %s778_s3 = sshll.u32 %s868_s2, 4  ;;  %s779_s3 = int_to_ptr.vmem [resolvable:$false] %s778_s3 }
  0x1a   : > { %s299_s27 = sadd.s32 %s697_s20, %s992_s19  ;;  %s667_s20 = sshll.u32 %s269_s17, 5 }
  0x1b   : > { %s668_s28 = sshll.u32 %s299_s27, 2  ;;  %s271_s27 = scalar_lea.vmem [#allocation2], %s667_s20 }
  0x1c   : > { %s301_s11 = scalar_lea.vmem %s1088_s0, %s668_s28  ;;  %s493_s28 = sshll.u32 %s271_s27, 4  ;;  %s1012_s28 = int_to_ptr.vmem [resolvable:$true] %s493_s28 }
  0x1d   : > { %v320_v2 = vld [vmem:[%s301_s11] sm:$0xf]  ;;  %s679_s11 = sshll.u32 %s490_s10, 7  ;;  %s774_s20 = scalar_lea.vmem %s1012_s28, 512 }
  0x1e   : > { %687 = vmatprep.subr.msk.mxu0 %vm338_vm1, %v320_v2  ;;  %695 = vmatprep.subr.msk.mxu1 %vm338_vm1, %v320_v2  ;;  %s1017_s15 = scalar_lea.hbm %s1092_s4, %s679_s11  ;;  %p775_p0 = scmp.ne.s32.totalorder %s1012_s28, %s774_s20 }
  0x1f   : > { %688 = vmatpush3.msk.msra.mxu0 %vm338_vm1, %v320_v2  ;;  %696 = vmatpush3.msk.msra.mxu1 %vm338_vm1, %v320_v2  ;;  %p781_p4 = scmp.lt.s32.totalorder %s1012_s28, %s779_s3 }
  0x20   : > { %690 = vmatmul.mubr.msk.f32.vlgmr.msra.gmra.mxu0 %vm325_vm0, %v322_v3  ;;  %693 = vmatmul.mubr.msk.f32.vlgmr.msra.gmra.mxu1 %vm325_vm0, %v324_v4  ;;  %p776_p1 = pnand %p775_p0, %p958_p3 }
  0x22   : > { %p777_p2 = pneg %p776_p1 }
  0xe0   : > { %v691_v5 = vpop.f32.mrf.mxu0  ;;  %v694_v6 = vpop.f32.mrf.mxu1 }
  0xe1   : > { %428 = vst [vmem:[%s271_s27 + $0x8] sm:$0xff] %v691_v5  ;;  %430 = vst [vmem:[%s271_s27 + $0x18] sm:$0xff] %v694_v6  ;;  %437 = vadd.xlane.f32.xlu1 %v694_v6  ;;  %433 = vadd.xlane.f32.xlu0 %v691_v5  ;;  %v445_v9 = vmul.f32 %v691_v5, %v691_v5  ;;  %v447_v11 = vmul.f32 %v694_v6, %v694_v6 }
  0xe2   : > { %v408_v7 = vpop.f32.mrf.mxu0  ;;  %v418_v8 = vpop.f32.mrf.mxu1 }
  0xe3   : > { %427 = vst [vmem:[%s271_s27] sm:$0xff] %v408_v7  ;;  %429 = vst [vmem:[%s271_s27 + $0x10] sm:$0xff] %v418_v8  ;;  %v444_v10 = vmul.f32 %v408_v7, %v408_v7  ;;  %v446_v12 = vmul.f32 %v418_v8, %v418_v8  ;;  %s780_s27 = scalar_lea.vmem %s779_s3, 1024 }
  0xe4   : > { %p782_p5 = scmp.lt.s32.totalorder %s780_s27, %s774_s20 }
  0xe5   : > { %435 = vadd.xlane.f32.xlu1 %v418_v8  ;;  %431 = vadd.xlane.f32.xlu0 %v408_v7 }
  0xe6   : > { %p783_p6 = por %p782_p5, %p781_p4 }
  0xe8   : > { %p784_p7 = pnand %p783_p6, %p777_p2 }
  0xe9   : > { %450 = vadd.xlane.f32.xlu1 %v445_v9  ;;  %448 = vadd.xlane.f32.xlu0 %v444_v10 }
  0xed   : > { %454 = vadd.xlane.f32.xlu1 %v447_v11  ;;  %452 = vadd.xlane.f32.xlu0 %v446_v12 }
  0xee   : > { %787 = shalt.err (!%p784_p7)
}
  0xef   : > { %s788_s17 = scalar_lea.hbm %s1017_s15, 512  ;;  %s792_s11 = scalar_lea.hbm %s1092_s4, 3072 }
  0xf0   : > { %p789_p9 = scmp.ne.s32.totalorder %s1017_s15, %s788_s17  ;;  %p793_p12 = scmp.lt.s32.totalorder %s1017_s15, %s1092_s4 }
  0xf1   : > { %p794_p13 = scmp.lt.s32.totalorder %s792_s11, %s788_s17 }
  0xf2   : > { %p790_p10 = pnand %p789_p9, %p958_p3 }
  0xf3   : > { %p795_p0 = por %p794_p13, %p793_p12 }
  0xf4   : > { %p791_p11 = pneg %p790_p10 }
  0xf6   : > { %p796_p1 = pnand %p795_p0, %p791_p11 }
  0xf8   : > { %799 = shalt.err (!%p796_p1)
}
  0xf9   : > { %s869_s20 = smov 128   ;;  %s870_s2 = smov 384   ;;  %vm439_vm2 = vcmask 7168  }
  0xfa   : > { %s871_s3 = smov 8   ;;  %s698_s27 = smul.u32 12, %s989_s18 }
  0xfb   : > { %700 = dma.vmem_to_hbm [thread:$0]  (%p958_p3), %s1012_s28, 512, %s1017_s15, %s1021_s16, %s869_s20, %s870_s2, %s871_s3  }
  0xfc   : > { %s669_s7 = sshll.u32 %s992_s19, 2 }
  0xfd   : > { %s308_s10 = sadd.s32 %s698_s27, %s669_s7 }
  0xfe   : > { %s670_s12 = sshll.u32 %s308_s10, 3 }
  0xff   : > { %s310_s11 = scalar_lea.vmem %s1093_s5, %s670_s12  ;;  %s319_s19 = scalar_lea.vmem %s1094_s6, %s670_s12 }
 0x16a   : > { %v438_v13 = vpop.xlane.xlu1 %437  ;;  %v434_v14 = vpop.xlane.xlu0 %433 }
 0x16b   : > { %443 = vst.msk [vmem:[%s310_s11 + $0x18] sm:$0xff] %vm439_vm2, %v438_v13  ;;  %441 = vst.msk [vmem:[%s310_s11 + $0x8] sm:$0xff] %vm439_vm2, %v434_v14 }
 0x16e   : > { %v436_v15 = vpop.xlane.xlu1 %435  ;;  %v432_v16 = vpop.xlane.xlu0 %431 }
 0x16f   : > { %442 = vst.msk [vmem:[%s310_s11 + $0x10] sm:$0xff] %vm439_vm2, %v436_v15  ;;  %440 = vst.msk [vmem:[%s310_s11] sm:$0xff] %vm439_vm2, %v432_v16 }
 0x172   : > { %v451_v17 = vpop.xlane.xlu1 %450  ;;  %v449_v18 = vpop.xlane.xlu0 %448 }
 0x173   : > { %457 = vst.msk [vmem:[%s319_s19 + $0x8] sm:$0xff] %vm439_vm2, %v451_v17  ;;  %456 = vst.msk [vmem:[%s319_s19] sm:$0xff] %vm439_vm2, %v449_v18 }
 0x176   : > { %v455_v19 = vpop.xlane.xlu1 %454  ;;  %v453_v20 = vpop.xlane.xlu0 %452 }
 0x177   : > { %459 = vst.msk [vmem:[%s319_s19 + $0x18] sm:$0xff] %vm439_vm2, %v455_v19  ;;  %458 = vst.msk [vmem:[%s319_s19 + $0x10] sm:$0xff] %vm439_vm2, %v453_v20 }
 0x178 PF: > { %p706_p3 = scmp.ge.s32.totalorder %s866_s26, 2  ;;  %s514_s28 = sand.u32 1, %s838_s21  }
 0x179   : > { %s515_s15 = scalar_lea.sflag [#allocation3], %s514_s28 }
 0x17a   : > { %p703_p2 = pnand %p706_p3, %p967_p8 }
 0x17c   : > { %p704_p4 = pneg %p703_p2 }
 0x17e   : > { %833 = dma.done.wait (%p704_p4), %s515_s15, 512  }
 0x17f   : > { %835 = vsyncadd (%p704_p4), %s515_s15, 4294966784  ;;  %s20_s26 = sadd.s32 1, %s866_s26   ;;  %s1097_s21 = smov %s842_s22 }
 0x180   : > { %p17_p5 = scmp.ge.s32.totalorder %s20_s26, 8   ;;  %s1098_s22 = smov %s846_s23 }
 0x181   : > { %s1099_s23 = smov %s976_s13  ;;  %s1100_s2 = smov %s858_s24 }
 0x182   : > { %s1101_s3 = smov %s862_s25  ;;  %s1102_s24 = smov %s1105_s29 }
 0x183   : > { %s1103_s25 = smov %s1109_s30  ;;  %19 = sbr.rel (!%p17_p5) target bundleno = 5 (0x5), region = 95 }
 0x188   :  { %544 = vsyncpa [#allocation3], 1 }
 0x189   :  { %546 = vsyncpa [#allocation3 + $0x1], 1 }

</bundles_post_ra>
